<compile_context>
chip_gen: v7x
topology: tpu7x:2x2x1
jax: 0.10.0
libtpu: 0.0.40
codegen_flags: <defaults>
</compile_context>

<pallas_src>
import functools

import jax
import jax.numpy as jnp
from jax.experimental import pallas as pl
from jax.experimental.pallas import tpu as pltpu


def _outconv_kernel(x_ref, w_ref, b_ref, o_ref):
    # x_ref: (C_in, T)    channels on sublanes, spatial on lanes
    # w_ref: (C_out, C_in) resident across the grid
    # b_ref: (C_out, 1)    f32 bias
    # o_ref: (C_out, T)    lane-dense output block
    x = x_ref[...].astype(jnp.float32)
    w = w_ref[...].astype(jnp.float32)
    c_in = x.shape[0]

    if c_in <= 16:
        # Unrolled VPU contraction: C_in broadcast FMAs, no MXU push/pop bubble.
        y = b_ref[...]  # (C_out, 1) broadcasts over lanes on first add
        for ci in range(c_in):
            y = y + w[:, ci:ci + 1] * x[ci:ci + 1, :]
    else:
        # Larger channel counts: use the MXU.
        y = jnp.dot(w, x, preferred_element_type=jnp.float32) + b_ref[...]

    o_ref[...] = jax.nn.sigmoid(y).astype(o_ref.dtype)


def _pick_tile_hw(hw, max_tile):
    """Pad H*W to a multiple of 128 and pick a lane tile that divides it."""
    hw_p = ((hw + 127) // 128) * 128
    k = hw_p // 128
    d_max = max(1, min(max_tile // 128, k))
    for d in range(d_max, 0, -1):
        if k % d == 0:
            return hw_p, 128 * d
    return hw_p, 128


@functools.partial(jax.jit, static_argnames=("max_tile_hw",))
def outconv_forward(x_nchw, weight, bias, max_tile_hw=2048):
    """1x1 conv + sigmoid.

    x_nchw: (N, C_in, H, W)
    weight: (C_out, C_in)   -- squeezed from PyTorch's (C_out, C_in, 1, 1)
    bias:   (C_out,)
    returns (N, C_out, H, W)
    """
    n, c_in, h, w = x_nchw.shape
    c_out = weight.shape[0]
    hw = h * w

    hw_p, tile_hw = _pick_tile_hw(hw, max_tile_hw)

    # NCHW -> (N, C_in, H*W): a free reshape (contiguous), no transpose pass.
    x3 = x_nchw.reshape(n, c_in, hw)
    if hw_p != hw:
        x3 = jnp.pad(x3, ((0, 0), (0, 0), (0, hw_p - hw)))

    w_mat = weight.astype(x3.dtype)                        # (C_out, C_in)
    b_mat = bias.reshape(c_out, 1).astype(jnp.float32)     # (C_out, 1)

    grid = (n, hw_p // tile_hw)

    out3 = pl.pallas_call(
        _outconv_kernel,
        out_shape=jax.ShapeDtypeStruct((n, c_out, hw_p), x3.dtype),
        grid_spec=pltpu.PrefetchScalarGridSpec(
            num_scalar_prefetch=0,
            grid=grid,
            in_specs=[
                # (1, C_in, tile_hw) block, batch dim squeezed away in-kernel.
                pl.BlockSpec((None, c_in, tile_hw), lambda b, j: (b, 0, j)),
                # Weight / bias resident (constant index map) across the grid.
                pl.BlockSpec((c_out, c_in), lambda b, j: (0, 0)),
                pl.BlockSpec((c_out, 1), lambda b, j: (0, 0)),
            ],
            out_specs=pl.BlockSpec((None, c_out, tile_hw), lambda b, j: (b, 0, j)),
        ),
        compiler_params=pltpu.CompilerParams(
            dimension_semantics=("parallel", "parallel")
        ),
    )(x3, w_mat, b_mat)

    if hw_p != hw:
        out3 = out3[:, :, :hw]
    return out3.reshape(n, c_out, h, w)


def init_outconv_params(key, in_channels, out_channels, dtype=jnp.float32):
    """Deterministic init mirroring nn.Conv2d defaults (kaiming-uniform-ish)."""
    kw, kb = jax.random.split(key)
    fan_in = in_channels  # kernel_size = 1
    bound = 1.0 / jnp.sqrt(fan_in)
    weight = jax.random.uniform(
        kw, (out_channels, in_channels), dtype, minval=-bound, maxval=bound
    )
    bias = jax.random.uniform(
        kb, (out_channels,), dtype, minval=-bound, maxval=bound
    )
    return weight, bias


if __name__ == "__main__":
    key = jax.random.PRNGKey(0)
    k_x, k_p = jax.random.split(key)

    N, C_IN, C_OUT, H, W = 2, 4, 3, 16, 16
    x = jax.random.normal(k_x, (N, C_IN, H, W), jnp.float32)
    weight, bias = init_outconv_params(k_p, C_IN, C_OUT)

    out = outconv_forward(x, weight, bias)
    jax.block_until_ready(out)

    # Pure-JAX reference: 1x1 conv == channel einsum, then sigmoid.
    ref = jax.nn.sigmoid(
        jnp.einsum("nchw,oc->nohw", x, weight) + bias[None, :, None, None]
    )
    assert out.shape == (N, C_OUT, H, W)
    assert jnp.allclose(out, ref, atol=1e-5, rtol=1e-5)

    # Also exercise a non-multiple-of-128 spatial size (padding path).
    x2 = jax.random.normal(k_x, (N, C_IN, 9, 13), jnp.float32)
    out2 = outconv_forward(x2, weight, bias)
    jax.block_until_ready(out2)
    ref2 = jax.nn.sigmoid(
        jnp.einsum("nchw,oc->nohw", x2, weight) + bias[None, :, None, None]
    )
    assert jnp.allclose(out2, ref2, atol=1e-5, rtol=1e-5)

    print("KERNEL_OK")
</pallas_src>

<mosaic_0001>
module attributes {stable_mosaic.version = 11 : i64} {
  func.func @_outconv_kernel(%arg0: i32, %arg1: i32, %arg2: memref<1x4x256xf32, #tpu.memory_space<vmem>>, %arg3: memref<3x4xf32, #tpu.memory_space<vmem>>, %arg4: memref<3x1xf32, #tpu.memory_space<vmem>>, %arg5: memref<1x3x256xf32, #tpu.memory_space<vmem>>) attributes {dimension_semantics = [#tpu.dimension_semantics<parallel>, #tpu.dimension_semantics<parallel>], iteration_bounds = array<i64: 2, 1>, scalar_prefetch = 0 : i64, scratch_operands = 0 : i64, tpu.core_type = #tpu.core_type<tc>, window_params = [{transform_indices = @transform_0, window_bounds = array<i64: 1, 4, 256>}, {pipeline_mode = #tpu.pipeline_mode<synchronous>, transform_indices = @transform_1, window_bounds = array<i64: 3, 4>}, {pipeline_mode = #tpu.pipeline_mode<synchronous>, transform_indices = @transform_2, window_bounds = array<i64: 3, 1>}, {transform_indices = @transform_3, window_bounds = array<i64: 1, 3, 256>}]} {
    %c0 = arith.constant 0 : index
    %c0_0 = arith.constant 0 : index
    %c0_1 = arith.constant 0 : index
    %0 = vector.load %arg2[%c0, %c0_0, %c0_1] : memref<1x4x256xf32, #tpu.memory_space<vmem>>, vector<1x4x256xf32>
    %1 = vector.shape_cast %0 : vector<1x4x256xf32> to vector<4x256xf32>
    %c0_2 = arith.constant 0 : index
    %c0_3 = arith.constant 0 : index
    %2 = vector.load %arg3[%c0_2, %c0_3] : memref<3x4xf32, #tpu.memory_space<vmem>>, vector<3x4xf32>
    %c0_4 = arith.constant 0 : index
    %c0_5 = arith.constant 0 : index
    %3 = vector.load %arg4[%c0_4, %c0_5] : memref<3x1xf32, #tpu.memory_space<vmem>>, vector<3x1xf32>
    %4 = vector.extract_strided_slice %2 {offsets = [0, 0], sizes = [3, 1], strides = [1, 1]} : vector<3x4xf32> to vector<3x1xf32>
    %5 = vector.extract_strided_slice %1 {offsets = [0, 0], sizes = [1, 256], strides = [1, 1]} : vector<4x256xf32> to vector<1x256xf32>
    %6 = vector.broadcast %4 : vector<3x1xf32> to vector<3x256xf32>
    %7 = vector.broadcast %5 : vector<1x256xf32> to vector<3x256xf32>
    %8 = arith.mulf %6, %7 : vector<3x256xf32>
    %9 = vector.broadcast %3 : vector<3x1xf32> to vector<3x256xf32>
    %10 = arith.addf %9, %8 : vector<3x256xf32>
    %11 = vector.extract_strided_slice %2 {offsets = [0, 1], sizes = [3, 1], strides = [1, 1]} : vector<3x4xf32> to vector<3x1xf32>
    %12 = vector.extract_strided_slice %1 {offsets = [1, 0], sizes = [1, 256], strides = [1, 1]} : vector<4x256xf32> to vector<1x256xf32>
    %13 = vector.broadcast %11 : vector<3x1xf32> to vector<3x256xf32>
    %14 = vector.broadcast %12 : vector<1x256xf32> to vector<3x256xf32>
    %15 = arith.mulf %13, %14 : vector<3x256xf32>
    %16 = arith.addf %10, %15 : vector<3x256xf32>
    %17 = vector.extract_strided_slice %2 {offsets = [0, 2], sizes = [3, 1], strides = [1, 1]} : vector<3x4xf32> to vector<3x1xf32>
    %18 = vector.extract_strided_slice %1 {offsets = [2, 0], sizes = [1, 256], strides = [1, 1]} : vector<4x256xf32> to vector<1x256xf32>
    %19 = vector.broadcast %17 : vector<3x1xf32> to vector<3x256xf32>
    %20 = vector.broadcast %18 : vector<1x256xf32> to vector<3x256xf32>
    %21 = arith.mulf %19, %20 : vector<3x256xf32>
    %22 = arith.addf %16, %21 : vector<3x256xf32>
    %23 = vector.extract_strided_slice %2 {offsets = [0, 3], sizes = [3, 1], strides = [1, 1]} : vector<3x4xf32> to vector<3x1xf32>
    %24 = vector.extract_strided_slice %1 {offsets = [3, 0], sizes = [1, 256], strides = [1, 1]} : vector<4x256xf32> to vector<1x256xf32>
    %25 = vector.broadcast %23 : vector<3x1xf32> to vector<3x256xf32>
    %26 = vector.broadcast %24 : vector<1x256xf32> to vector<3x256xf32>
    %27 = arith.mulf %25, %26 : vector<3x256xf32>
    %28 = arith.addf %22, %27 : vector<3x256xf32>
    %29 = arith.negf %28 : vector<3x256xf32>
    %30 = math.exp %29 : vector<3x256xf32>
    %cst = arith.constant 1.000000e+00 : f32
    %31 = vector.broadcast %cst : f32 to vector<3x256xf32>
    %32 = arith.addf %31, %30 : vector<3x256xf32>
    %33 = arith.divf %31, %32 : vector<3x256xf32>
    %c0_6 = arith.constant 0 : index
    %c0_7 = arith.constant 0 : index
    %c0_8 = arith.constant 0 : index
    %34 = vector.load %arg5[%c0_6, %c0_7, %c0_8] : memref<1x3x256xf32, #tpu.memory_space<vmem>>, vector<1x3x256xf32>
    %35 = vector.shape_cast %34 : vector<1x3x256xf32> to vector<3x256xf32>
    %36 = vector.shape_cast %33 : vector<3x256xf32> to vector<1x3x256xf32>
    tpu.vector_store %arg5[%c0_6, %c0_7, %c0_8], %36 {strides = array<i32>} : memref<1x3x256xf32, #tpu.memory_space<vmem>>, vector<1x3x256xf32>,
    return
  }
  func.func @transform_0(%arg0: i32, %arg1: i32) -> (i32, i32, i32) {
    %c0_i32 = arith.constant 0 : i32
    %c0_i32_0 = arith.constant 0 : i32
    return %arg0, %c0_i32, %arg1 : i32, i32, i32
  }
  func.func @transform_1(%arg0: i32, %arg1: i32) -> (i32, i32) {
    %c0_i32 = arith.constant 0 : i32
    %c0_i32_0 = arith.constant 0 : i32
    %c0_i32_1 = arith.constant 0 : i32
    return %c0_i32, %c0_i32_0 : i32, i32
  }
  func.func @transform_2(%arg0: i32, %arg1: i32) -> (i32, i32) {
    %c0_i32 = arith.constant 0 : i32
    %c0_i32_0 = arith.constant 0 : i32
    %c0_i32_1 = arith.constant 0 : i32
    return %c0_i32, %c0_i32_0 : i32, i32
  }
  func.func @transform_3(%arg0: i32, %arg1: i32) -> (i32, i32, i32) {
    %c0_i32 = arith.constant 0 : i32
    %c0_i32_0 = arith.constant 0 : i32
    return %arg0, %c0_i32, %arg1 : i32, i32, i32
  }
}

</mosaic_0001>

<bundles_post_ra>
// kernel: outconv_forward.1
= control target key start
LH: loop header
LB: loop body
LE: loop exit
PB: predicated region body
PF: predicated region fallthrough
CT: control target
= control target key end

     0   :  { %s531_s12 = smov 0   ;;  %s533_s13 = smov 0   ;;  %s577_s0 = inlined_call_operand.vmem [shape: f32[2,4,256], index: 0, kind: input, shape index: {}]   ;;  %s578_s1 = inlined_call_operand.vmem [shape: f32[3,4], index: 1, kind: input, shape index: {}]   ;;  %s579_s2 = inlined_call_operand.vmem [shape: f32[3,1], index: 2, kind: input, shape index: {}]   ;;  %s580_s3 = inlined_call_operand.vmem [shape: f32[2,3,256], index: 3, kind: output, shape index: {}]  }
   0x1   :  { %s535_s14 = smov 0  }
   0x2 LB: > { %s25_s15 = sadd.s32 1, %s501_s13  ;;  %p432_p0 = scmp.ge.s32.totalorder %s505_s14, 1  ;;  %s505_s14 = sphi %s535_s14, %s13_s14   ;;  %s501_s13 = sphi %s533_s13, %s582_s13   ;;  %s497_s12 = sphi %s531_s12, %s581_s12  }
   0x3   : > { %p27_p1 = scmp.ge.s32.totalorder %s25_s15, 2  ;;  %p158_p2 = scmp.lt.s32.totalorder %s505_s14, 3 }
   0x5   : > { %s584_s15 = smov (%p27_p1, %s25_s15), 0  ;;  %p159_p3 = pnand %p432_p0, %p158_p2 }
   0x6   : > { %v211_v0 = vld [vmem:[%s578_s1] sm:$0x7] (!%p159_p3)  ;;  %v507_v1 = vmov (!%p159_p3), 0   ;;  %v508_v2 = vmov (!%p159_p3), 1   ;;  %v509_v4 = vmov (!%p159_p3), 2   ;;  %v510_v5 = vmov (!%p159_p3), 3  }
   0x7   : > { %162 = sbr.rel (%p159_p3) target bundleno = 179 (0xb3), region = 32  ;;  %471 = vset.pattern.permute.xlu0 (!%p159_p3), %v507_v1  ;;  %472 = vset.pattern.permute.xlu1 (!%p159_p3), %v508_v2  ;;  %v212_v3 = vld [vmem:[%s579_s2] sm:$0x7] (!%p159_p3)  ;;  %p191_p4 = scmp.lt.s32.totalorder (!%p159_p3), %s497_s12, 1  ;;  %v219_v6 = vlaneseq (!%p159_p3) }
   0x8   : > { %215 = vperm.xlu0 (!%p159_p3), %471, %v211_v0   ;;  %247 = vperm.xlu1 (!%p159_p3), %472, %v211_v0  }
   0x9   : > { %v220_v7 = vshrl.u32 (!%p159_p3), %v219_v6, 7 }
   0xb   : > { %v221_v8 = vsub.s32 (!%p159_p3), 0, %v220_v7  ;;  %v225_v9 = vsub.s32 (!%p159_p3), 4, %v220_v7  ;;  %v252_v11 = vsub.s32 (!%p159_p3), 1, %v220_v7  ;;  %v256_v12 = vsub.s32 (!%p159_p3), 5, %v220_v7 }
   0xc   : > { %241 = vperm.xlu0 (!%p159_p3), %471, %v212_v3   ;;  %473 = vset.pattern.permute.xlu1 (!%p159_p3), %v509_v4  ;;  %v278_v13 = vsub.s32 (!%p159_p3), 2, %v220_v7  ;;  %v282_v14 = vsub.s32 (!%p159_p3), 6, %v220_v7  ;;  %v304_v21 = vsub.s32 (!%p159_p3), 3, %v220_v7  ;;  %v308_v22 = vsub.s32 (!%p159_p3), 7, %v220_v7 }
   0xd   : > { %273 = vperm.xlu1 (!%p159_p3), %473, %v211_v0  }
   0xe   : > { %s586_s12 = smov (!%p191_p4, %s497_s12), 1 }
   0xf   : > { %s441_s20 = sshll.u32 %s586_s12, 3 }
  0x10   : > { %474 = vset.pattern.permute.xlu0 %v510_v5  ;;  %s198_s23 = scalar_lea.vmem %s577_s0, %s441_s20  ;;  %s208_s26 = scalar_lea.vmem %s580_s3, %s441_s20 }
  0x11   : > { %299 = vperm.xlu0 %474, %v211_v0   ;;  %v210_v10 = vld [vmem:[%s198_s23] sm:$0xff] }
  0x12   : > { %v222_v15 = vrot.slane %v210_v10, %v221_v8  ;;  %v226_v16 = vrot.slane %v210_v10, %v225_v9  ;;  %v253_v17 = vrot.slane %v210_v10, %v252_v11  ;;  %v257_v18 = vrot.slane %v210_v10, %v256_v12 }
  0x13   : > { %v279_v19 = vrot.slane %v210_v10, %v278_v13  ;;  %v283_v20 = vrot.slane %v210_v10, %v282_v14  ;;  %v305_v31 = vrot.slane %v210_v10, %v304_v21  ;;  %v309_v32 = vrot.slane %v210_v10, %v308_v22 }
  0x14   : > { %v232_v23 = vrot.slane %v222_v15, %v221_v8  ;;  %v236_v24 = vrot.slane %v226_v16, %v221_v8  ;;  %v263_v27 = vrot.slane %v253_v17, %v252_v11  ;;  %v267_v28 = vrot.slane %v257_v18, %v252_v11 }
  0x15   : > { %v289_v29 = vrot.slane %v279_v19, %v278_v13  ;;  %v293_v30 = vrot.slane %v283_v20, %v278_v13  ;;  %v315_v43 = vrot.slane %v305_v31, %v304_v21  ;;  %v319_v44 = vrot.slane %v309_v32, %v304_v21 }
  0x87   : > { %v216_v25 = vpop.permute.xlu0 %215  ;;  %v248_v26 = vpop.permute.xlu1 %247 }
  0x88   : > { %v237_v33 = vmul.f32 %v232_v23, %v216_v25  ;;  %v238_v34 = vmul.f32 %v236_v24, %v216_v25  ;;  %v268_v36 = vmul.f32 %v263_v27, %v248_v26  ;;  %v269_v37 = vmul.f32 %v267_v28, %v248_v26 }
  0x8b   : > { %v242_v35 = vpop.permute.xlu0 %241 }
  0x8c   : > { %v244_v38 = vadd.f32 %v242_v35, %v237_v33  ;;  %v245_v39 = vadd.f32 %v242_v35, %v238_v34  ;;  %v274_v40 = vpop.permute.xlu1 %273 }
  0x8d   : > { %v294_v41 = vmul.f32 %v289_v29, %v274_v40  ;;  %v295_v42 = vmul.f32 %v293_v30, %v274_v40 }
  0x8e   : > { %v270_v45 = vadd.f32 %v268_v36, %v244_v38  ;;  %v271_v46 = vadd.f32 %v269_v37, %v245_v39 }
  0x90   : > { %v296_v47 = vadd.f32 %v294_v41, %v270_v45  ;;  %v297_v48 = vadd.f32 %v295_v42, %v271_v46  ;;  %v300_v49 = vpop.permute.xlu0 %299 }
  0x91   : > { %v320_v50 = vmul.f32 %v315_v43, %v300_v49  ;;  %v321_v51 = vmul.f32 %v319_v44, %v300_v49 }
  0x93   : > { %v322_v52 = vadd.f32 %v320_v50, %v296_v47  ;;  %v323_v53 = vadd.f32 %v321_v51, %v297_v48 }
  0x95   : > { %v437_v54 = vmul.f32 -1.442695, %v322_v52  ;;  %v438_v55 = vmul.f32 -1.442695, %v323_v53 }
  0x97   : > { %475 = vpow2.f32 %v437_v54 }
  0x98   : > { %477 = vpow2.f32 %v438_v55 }
  0xa1   : > { %v476_v56 = vpop.eup %475 }
  0xa2   : > { %v478_v57 = vpop.eup %477  ;;  %v330_v58 = vadd.f32 1.0, %v476_v56 }
  0xa3   : > { %v331_v59 = vadd.f32 1.0, %v478_v57 }
  0xa4   : > { %479 = vrcp.f32 %v330_v58 }
  0xa5   : > { %481 = vrcp.f32 %v331_v59 }
  0xae   : > { %v480_v60 = vpop.eup %479 }
  0xaf   : > { %v482_v61 = vpop.eup %481 }
  0xb0   : > { %v338_v62 = vcombine.low %v480_v60, %v482_v61 }
  0xb2   : > { %340 = vst [vmem:[%s208_s26] sm:$0x77] %v338_v62 }
  0xb3 PF: > { %s13_s14 = sadd.s32 1, %s505_s14   ;;  %s581_s12 = smov %s501_s13 }
  0xb4   : > { %p10_p5 = scmp.ge.s32.totalorder %s13_s14, 4   ;;  %s582_s13 = smov %s584_s15 }
  0xb6   :  { %12 = sbr.rel (!%p10_p5) target bundleno = 2 (0x2), region = 62 }

</bundles_post_ra>
